<compile_context>
chip_gen: v7x
topology: tpu7x:2x2x1
jax: 0.10.0
libtpu: 0.0.40
codegen_flags: <defaults>
</compile_context>

<pallas_src>
import functools

import jax
import jax.numpy as jnp
from jax.experimental import pallas as pl
from jax.experimental.pallas import tpu as pltpu

LANE = 128  # TPU lane width; head output padded to this for dense stores


def ggru_kernel(x_ref, a_ref,
                w_in_ref, b_in_ref,        # [Wzi|Wri|Whi] bf16 (F,3F), pre-summed biases f32 (1,3F)
                w_zr_ref, w_hh_ref,        # [Wzh|Wrh] bf16 (F,2F), Whh bf16 (F,F)
                pool_ref, wlin_ref, blin_ref,
                o_ref, *, T, N):
    """One sample per grid step: T-step graph-GRU + global mean pool + linear head."""
    F = x_ref.shape[-1]
    bf16 = jnp.bfloat16

    # ---- input-side GCN (no dependence on H), merged into 2 big matmuls ---------
    #   x_flat (T*N,F) @ [Wzi|Wri|Whi] (F,3F)   then   blockdiag(A_t) (T*N,T*N) @ that
    xw = jnp.dot(x_ref[...], w_in_ref[...], preferred_element_type=jnp.float32)
    gates_in = (jnp.dot(a_ref[...], xw.astype(bf16),
                        preferred_element_type=jnp.float32)
                + b_in_ref[...])                                   # (T*N, 3F) f32

    # ---- recurrence: H and S carried as SSA values (vregs) ----------------------
    rows = jax.lax.broadcasted_iota(jnp.int32, (N, F), 0)
    cols = jax.lax.broadcasted_iota(jnp.int32, (N, F), 1)
    H = (rows == cols).astype(jnp.float32)                         # initHidden(): eye(N, F)
    S = jnp.zeros((N, F), jnp.float32)

    w_zr = w_zr_ref[...]                                           # bf16 (F, 2F)
    w_hh = w_hh_ref[...]                                           # bf16 (F, F)

    for t in range(T):                                             # unrolled, T == 4
        gi = gates_in[t * N:(t + 1) * N]                           # (N, 3F) f32
        zr_h = jnp.dot(H.astype(bf16), w_zr, preferred_element_type=jnp.float32)
        sig = jax.nn.sigmoid(gi[:, :2 * F] + zr_h)                 # fused z/r sigmoid (N, 2F)
        z = sig[:, :F]
        r = sig[:, F:]
        Hr = r * H                                                 # weigh_graph(r, output)  [in-place]
        cand = jnp.tanh(gi[:, 2 * F:]
                        + jnp.dot(Hr.astype(bf16), w_hh,
                                  preferred_element_type=jnp.float32))
        Hnew = (1.0 - z) * Hr                                      # weigh_graph(1-z, output) [in-place]
        S = S + Hnew + z * cand                                    # add_graphs / sum over steps
        H = Hnew                                                   # mutated Hidden_State carries over

    # ---- head: global_mean_pool -> dropout(eval)=identity -> linear (lane-padded) ----
    pooled = jnp.dot(pool_ref[...].astype(bf16), S.astype(bf16),
                     preferred_element_type=jnp.float32)           # (B, F)
    o_ref[...] = (jnp.dot(pooled.astype(bf16), wlin_ref[...],
                          preferred_element_type=jnp.float32)
                  + blin_ref[...])                                 # (B, LANE)


def prepare_params(params):
    """Fuse & pre-cast parameters ONCE (kept out of the per-forward path)."""
    F = params["wzi"].shape[0]
    C = params["wlin"].shape[1]
    bf16 = jnp.bfloat16
    w_in = jnp.concatenate([params["wzi"], params["wri"], params["whi"]], axis=1)   # (F, 3F)
    b_in = jnp.concatenate([params["bzi"] + params["bzh"],
                            params["bri"] + params["brh"],
                            params["bhi"] + params["bhh"]], axis=1)                 # (1, 3F)
    w_zr = jnp.concatenate([params["wzh"], params["wrh"]], axis=1)                  # (F, 2F)
    wlin_pad = jnp.zeros((F, LANE), jnp.float32).at[:, :C].set(params["wlin"])
    blin_pad = jnp.zeros((1, LANE), jnp.float32).at[:, :C].set(params["blin"])
    return {
        "w_in": w_in.astype(bf16), "b_in": b_in.astype(jnp.float32),
        "w_zr": w_zr.astype(bf16), "w_hh": params["whh"].astype(bf16),
        "wlin": wlin_pad.astype(bf16), "blin": blin_pad,
    }


@functools.partial(jax.jit, static_argnames=("num_classes",))
def ggru_abide_forward(x_all, ahat_all, fused, pool_mat, *, num_classes):
    """x_all: (S, T, N, F) node features, ahat_all: (S, T, N, N) GCN-normalized adj,
    pool_mat: (B, N) global_mean_pool matrix. Returns (S, B, num_classes) logits."""
    S_, T, N, F = x_all.shape
    B = pool_mat.shape[0]
    bf16 = jnp.bfloat16

    # Per-sample prep: flatten time into rows; build block-diag(A_1..A_T) so the whole
    # input-side GCN is one matmul; cast MXU operands to bf16 (gate math stays f32).
    x_flat = x_all.reshape(S_, T * N, F).astype(bf16)
    a_blk = jnp.einsum("tu,stnm->stnum", jnp.eye(T, dtype=ahat_all.dtype),
                       ahat_all).reshape(S_, T * N, T * N).astype(bf16)

    kernel = functools.partial(ggru_kernel, T=T, N=N)
    resident = lambda shape: pl.BlockSpec(shape, lambda s, _shape=shape: (0,) * len(_shape))

    out_pad = pl.pallas_call(
        kernel,
        grid=(S_,),
        in_specs=[
            pl.BlockSpec((None, T * N, F), lambda s: (s, 0, 0)),        # x per sample
            pl.BlockSpec((None, T * N, T * N), lambda s: (s, 0, 0)),    # blockdiag A per sample
            resident((F, 3 * F)),     # w_in
            resident((1, 3 * F)),     # b_in
            resident((F, 2 * F)),     # w_zr
            resident((F, F)),         # w_hh
            resident((B, N)),         # pool
            resident((F, LANE)),      # wlin (lane-padded)
            resident((1, LANE)),      # blin (lane-padded)
        ],
        out_specs=pl.BlockSpec((None, B, LANE), lambda s: (s, 0, 0)),
        out_shape=jax.ShapeDtypeStruct((S_, B, LANE), jnp.float32),
        compiler_params=pltpu.CompilerParams(
            dimension_semantics=("parallel",)),   # sample axis -> both TCs on v7x
    )(x_flat, a_blk, fused["w_in"], fused["b_in"], fused["w_zr"], fused["w_hh"],
      pool_mat, fused["wlin"], fused["blin"])

    return out_pad[:, :, :num_classes]


def reference_forward(x_seq, ahat_seq, params, pool_mat, bf16_operands):
    """Pure-JAX restatement of the mutation-faithful PyTorch forward (one sample).
    bf16_operands=True mirrors the kernel's bf16 MXU-operand rounding exactly;
    False is the full-f32 model (used as a loose sanity check)."""
    q = ((lambda v: v.astype(jnp.bfloat16).astype(jnp.float32))
         if bf16_operands else (lambda v: v))
    T, N, F = x_seq.shape
    H = jnp.eye(N, F, dtype=jnp.float32)
    S = jnp.zeros((N, F), jnp.float32)
    for t in range(T):
        xi, A = x_seq[t], ahat_seq[t]
        gcn = lambda w, b: q(A) @ q(q(xi) @ q(w)) + b
        z = jax.nn.sigmoid(gcn(params["wzi"], params["bzi"])
                           + q(H) @ q(params["wzh"]) + params["bzh"])
        r = jax.nn.sigmoid(gcn(params["wri"], params["bri"])
                           + q(H) @ q(params["wrh"]) + params["brh"])
        Hr = r * H
        cand = jnp.tanh(gcn(params["whi"], params["bhi"])
                        + q(Hr) @ q(params["whh"]) + params["bhh"])
        Hnew = (1.0 - z) * Hr
        S = S + Hnew + z * cand
        H = Hnew
    pooled = q(pool_mat) @ q(S)
    return q(pooled) @ q(params["wlin"]) + params["blin"]


if __name__ == "__main__":
    # 4 independent samples; each: 2 graphs of 8 nodes (N=16 total), F=hidden=32,
    # num_classes=2, T=4 time steps (hardcoded by the module's forward).
    T, B_GRAPHS, NODES_PER_GRAPH, F, C = 4, 2, 8, 32, 2
    N = B_GRAPHS * NODES_PER_GRAPH
    NUM_SAMPLES = 4

    key = jax.random.PRNGKey(0)
    k_x, k_a, *k_p = jax.random.split(key, 22)

    # node features per sample / time step
    x_all = jax.random.normal(k_x, (NUM_SAMPLES, T, N, F), jnp.float32)

    # random symmetric weighted adjacencies, block-diagonal per graph within a sample
    # (PyG batching: no cross-graph edges), GCN-normalized D^-1/2 (A+I) D^-1/2.
    block = jnp.kron(jnp.eye(B_GRAPHS, dtype=jnp.float32),
                     jnp.ones((NODES_PER_GRAPH, NODES_PER_GRAPH), jnp.float32))
    raw = jax.random.uniform(k_a, (NUM_SAMPLES, T, N, N), jnp.float32)
    A = 0.5 * (raw + jnp.swapaxes(raw, -1, -2)) * block * (1.0 - jnp.eye(N))
    A = A + jnp.eye(N, dtype=jnp.float32)
    dinv = 1.0 / jnp.sqrt(A.sum(axis=-1))
    ahat_all = dinv[..., :, None] * A * dinv[..., None, :]

    # deterministic synthetic parameters (shapes follow the module; W stored (in,out))
    def w(k):
        return jax.random.normal(k, (F, F), jnp.float32) * (1.0 / jnp.sqrt(F))

    def b(k):
        return jax.random.normal(k, (1, F), jnp.float32) * 0.01

    params = {
        "wzi": w(k_p[0]),  "bzi": b(k_p[1]),
        "wzh": w(k_p[2]),  "bzh": b(k_p[3]),
        "wri": w(k_p[4]),  "bri": b(k_p[5]),
        "wrh": w(k_p[6]),  "brh": b(k_p[7]),
        "whi": w(k_p[8]),  "bhi": b(k_p[9]),
        "whh": w(k_p[10]), "bhh": b(k_p[11]),
        "wlin": jax.random.normal(k_p[12], (F, C), jnp.float32) * (1.0 / jnp.sqrt(F)),
        "blin": jax.random.normal(k_p[13], (1, C), jnp.float32) * 0.01,
    }

    # global_mean_pool matrix from the batch vector [0]*8 + [1]*8
    batch_vec = jnp.repeat(jnp.arange(B_GRAPHS), NODES_PER_GRAPH)
    pool_mat = (jax.nn.one_hot(batch_vec, B_GRAPHS, dtype=jnp.float32).T
                / float(NODES_PER_GRAPH))

    fused = prepare_params(params)                       # once, outside the per-call path
    logits = ggru_abide_forward(x_all, ahat_all, fused, pool_mat, num_classes=C)
    logits = jax.block_until_ready(logits)
    assert logits.shape == (NUM_SAMPLES, B_GRAPHS, C)

    for s in range(NUM_SAMPLES):
        ref_matched = reference_forward(x_all[s], ahat_all[s], params, pool_mat, True)
        ref_f32 = reference_forward(x_all[s], ahat_all[s], params, pool_mat, False)
        assert jnp.allclose(logits[s], ref_matched, rtol=2e-3, atol=2e-3), \
            (s, logits[s], ref_matched)
        assert jnp.allclose(logits[s], ref_f32, rtol=1e-1, atol=1e-1), \
            (s, logits[s], ref_f32)

    print("KERNEL_OK")
</pallas_src>

<mosaic_0001>
module attributes {stable_mosaic.version = 11 : i64} {
  func.func @ggru_kernel(%arg0: i32, %arg1: memref<1x64x32xbf16, #tpu.memory_space<vmem>>, %arg2: memref<1x64x64xbf16, #tpu.memory_space<vmem>>, %arg3: memref<32x96xbf16, #tpu.memory_space<vmem>>, %arg4: memref<1x96xf32, #tpu.memory_space<vmem>>, %arg5: memref<32x64xbf16, #tpu.memory_space<vmem>>, %arg6: memref<32x32xbf16, #tpu.memory_space<vmem>>, %arg7: memref<2x16xf32, #tpu.memory_space<vmem>>, %arg8: memref<32x128xbf16, #tpu.memory_space<vmem>>, %arg9: memref<1x128xf32, #tpu.memory_space<vmem>>, %arg10: memref<1x2x128xf32, #tpu.memory_space<vmem>>) attributes {dimension_semantics = [#tpu.dimension_semantics<parallel>], iteration_bounds = array<i64: 4>, scalar_prefetch = 0 : i64, scratch_operands = 0 : i64, tpu.core_type = #tpu.core_type<tc>, window_params = [{transform_indices = @transform_0, window_bounds = array<i64: 1, 64, 32>}, {transform_indices = @transform_1, window_bounds = array<i64: 1, 64, 64>}, {pipeline_mode = #tpu.pipeline_mode<synchronous>, transform_indices = @transform_2, window_bounds = array<i64: 32, 96>}, {pipeline_mode = #tpu.pipeline_mode<synchronous>, transform_indices = @transform_3, window_bounds = array<i64: 1, 96>}, {pipeline_mode = #tpu.pipeline_mode<synchronous>, transform_indices = @transform_4, window_bounds = array<i64: 32, 64>}, {pipeline_mode = #tpu.pipeline_mode<synchronous>, transform_indices = @transform_5, window_bounds = array<i64: 32, 32>}, {pipeline_mode = #tpu.pipeline_mode<synchronous>, transform_indices = @transform_6, window_bounds = array<i64: 2, 16>}, {pipeline_mode = #tpu.pipeline_mode<synchronous>, transform_indices = @transform_7, window_bounds = array<i64: 32, 128>}, {pipeline_mode = #tpu.pipeline_mode<synchronous>, transform_indices = @transform_8, window_bounds = array<i64: 1, 128>}, {transform_indices = @transform_9, window_bounds = array<i64: 1, 2, 128>}]} {
    %c0 = arith.constant 0 : index
    %c0_0 = arith.constant 0 : index
    %c0_1 = arith.constant 0 : index
    %0 = vector.load %arg1[%c0, %c0_0, %c0_1] : memref<1x64x32xbf16, #tpu.memory_space<vmem>>, vector<1x64x32xbf16>
    %1 = vector.shape_cast %0 : vector<1x64x32xbf16> to vector<64x32xbf16>
    %c0_2 = arith.constant 0 : index
    %c0_3 = arith.constant 0 : index
    %2 = vector.load %arg3[%c0_2, %c0_3] : memref<32x96xbf16, #tpu.memory_space<vmem>>, vector<32x96xbf16>
    %cst = arith.constant dense<0.000000e+00> : vector<64x96xf32>
    %3 = tpu.matmul %1, %2, %cst {dimension_numbers = #tpu.dot_dimension_numbers<[1], [0], [0], [1], [0, 0, 1, 1], [], []>} : vector<64x32xbf16>, vector<32x96xbf16>, vector<64x96xf32> -> vector<64x96xf32>
    %c0_4 = arith.constant 0 : index
    %c0_5 = arith.constant 0 : index
    %c0_6 = arith.constant 0 : index
    %4 = vector.load %arg2[%c0_4, %c0_5, %c0_6] : memref<1x64x64xbf16, #tpu.memory_space<vmem>>, vector<1x64x64xbf16>
    %5 = vector.shape_cast %4 : vector<1x64x64xbf16> to vector<64x64xbf16>
    %6 = arith.truncf %3 : vector<64x96xf32> to vector<64x96xbf16>
    %cst_7 = arith.constant dense<0.000000e+00> : vector<64x96xf32>
    %7 = tpu.matmul %5, %6, %cst_7 {dimension_numbers = #tpu.dot_dimension_numbers<[1], [0], [0], [1], [0, 0, 1, 1], [], []>} : vector<64x64xbf16>, vector<64x96xbf16>, vector<64x96xf32> -> vector<64x96xf32>
    %c0_8 = arith.constant 0 : index
    %c0_9 = arith.constant 0 : index
    %8 = vector.load %arg4[%c0_8, %c0_9] : memref<1x96xf32, #tpu.memory_space<vmem>>, vector<1x96xf32>
    %9 = vector.broadcast %8 : vector<1x96xf32> to vector<64x96xf32>
    %10 = arith.addf %7, %9 : vector<64x96xf32>
    %11 = tpu.iota {dimensions = array<i32: 0>} : vector<16x32xi32>
    %12 = tpu.iota {dimensions = array<i32: 1>} : vector<16x32xi32>
    %13 = arith.cmpi eq, %11, %12 : vector<16x32xi32>
    %14 = arith.extui %13 : vector<16x32xi1> to vector<16x32xi32>
    %15 = arith.sitofp %14 : vector<16x32xi32> to vector<16x32xf32>
    %cst_10 = arith.constant 0.000000e+00 : f32
    %16 = vector.broadcast %cst_10 : f32 to vector<16x32xf32>
    %c0_11 = arith.constant 0 : index
    %c0_12 = arith.constant 0 : index
    %17 = vector.load %arg5[%c0_11, %c0_12] : memref<32x64xbf16, #tpu.memory_space<vmem>>, vector<32x64xbf16>
    %c0_13 = arith.constant 0 : index
    %c0_14 = arith.constant 0 : index
    %18 = vector.load %arg6[%c0_13, %c0_14] : memref<32x32xbf16, #tpu.memory_space<vmem>>, vector<32x32xbf16>
    %19 = vector.extract_strided_slice %10 {offsets = [0, 0], sizes = [16, 96], strides = [1, 1]} : vector<64x96xf32> to vector<16x96xf32>
    %20 = arith.truncf %15 : vector<16x32xf32> to vector<16x32xbf16>
    %cst_15 = arith.constant dense<0.000000e+00> : vector<16x64xf32>
    %21 = tpu.matmul %20, %17, %cst_15 {dimension_numbers = #tpu.dot_dimension_numbers<[1], [0], [0], [1], [0, 0, 1, 1], [], []>} : vector<16x32xbf16>, vector<32x64xbf16>, vector<16x64xf32> -> vector<16x64xf32>
    %22 = vector.extract_strided_slice %19 {offsets = [0, 0], sizes = [16, 64], strides = [1, 1]} : vector<16x96xf32> to vector<16x64xf32>
    %23 = arith.addf %22, %21 : vector<16x64xf32>
    %24 = arith.negf %23 : vector<16x64xf32>
    %25 = math.exp %24 : vector<16x64xf32>
    %cst_16 = arith.constant 1.000000e+00 : f32
    %26 = vector.broadcast %cst_16 : f32 to vector<16x64xf32>
    %27 = arith.addf %26, %25 : vector<16x64xf32>
    %28 = arith.divf %26, %27 : vector<16x64xf32>
    %29 = vector.extract_strided_slice %28 {offsets = [0, 0], sizes = [16, 32], strides = [1, 1]} : vector<16x64xf32> to vector<16x32xf32>
    %30 = vector.extract_strided_slice %28 {offsets = [0, 32], sizes = [16, 32], strides = [1, 1]} : vector<16x64xf32> to vector<16x32xf32>
    %31 = arith.mulf %30, %15 : vector<16x32xf32>
    %32 = vector.extract_strided_slice %19 {offsets = [0, 64], sizes = [16, 32], strides = [1, 1]} : vector<16x96xf32> to vector<16x32xf32>
    %33 = arith.truncf %31 : vector<16x32xf32> to vector<16x32xbf16>
    %cst_17 = arith.constant dense<0.000000e+00> : vector<16x32xf32>
    %34 = tpu.matmul %33, %18, %cst_17 {dimension_numbers = #tpu.dot_dimension_numbers<[1], [0], [0], [1], [0, 0, 1, 1], [], []>} : vector<16x32xbf16>, vector<32x32xbf16>, vector<16x32xf32> -> vector<16x32xf32>
    %35 = arith.addf %32, %34 : vector<16x32xf32>
    %36 = math.tanh %35 : vector<16x32xf32>
    %cst_18 = arith.constant 1.000000e+00 : f32
    %37 = vector.broadcast %cst_18 : f32 to vector<16x32xf32>
    %38 = arith.subf %37, %29 : vector<16x32xf32>
    %39 = arith.mulf %38, %31 : vector<16x32xf32>
    %40 = arith.addf %16, %39 : vector<16x32xf32>
    %41 = arith.mulf %29, %36 : vector<16x32xf32>
    %42 = arith.addf %40, %41 : vector<16x32xf32>
    %43 = vector.extract_strided_slice %10 {offsets = [16, 0], sizes = [16, 96], strides = [1, 1]} : vector<64x96xf32> to vector<16x96xf32>
    %44 = arith.truncf %39 : vector<16x32xf32> to vector<16x32xbf16>
    %cst_19 = arith.constant dense<0.000000e+00> : vector<16x64xf32>
    %45 = tpu.matmul %44, %17, %cst_19 {dimension_numbers = #tpu.dot_dimension_numbers<[1], [0], [0], [1], [0, 0, 1, 1], [], []>} : vector<16x32xbf16>, vector<32x64xbf16>, vector<16x64xf32> -> vector<16x64xf32>
    %46 = vector.extract_strided_slice %43 {offsets = [0, 0], sizes = [16, 64], strides = [1, 1]} : vector<16x96xf32> to vector<16x64xf32>
    %47 = arith.addf %46, %45 : vector<16x64xf32>
    %48 = arith.negf %47 : vector<16x64xf32>
    %49 = math.exp %48 : vector<16x64xf32>
    %cst_20 = arith.constant 1.000000e+00 : f32
    %50 = vector.broadcast %cst_20 : f32 to vector<16x64xf32>
    %51 = arith.addf %50, %49 : vector<16x64xf32>
    %52 = arith.divf %50, %51 : vector<16x64xf32>
    %53 = vector.extract_strided_slice %52 {offsets = [0, 0], sizes = [16, 32], strides = [1, 1]} : vector<16x64xf32> to vector<16x32xf32>
    %54 = vector.extract_strided_slice %52 {offsets = [0, 32], sizes = [16, 32], strides = [1, 1]} : vector<16x64xf32> to vector<16x32xf32>
    %55 = arith.mulf %54, %39 : vector<16x32xf32>
    %56 = vector.extract_strided_slice %43 {offsets = [0, 64], sizes = [16, 32], strides = [1, 1]} : vector<16x96xf32> to vector<16x32xf32>
    %57 = arith.truncf %55 : vector<16x32xf32> to vector<16x32xbf16>
    %cst_21 = arith.constant dense<0.000000e+00> : vector<16x32xf32>
    %58 = tpu.matmul %57, %18, %cst_21 {dimension_numbers = #tpu.dot_dimension_numbers<[1], [0], [0], [1], [0, 0, 1, 1], [], []>} : vector<16x32xbf16>, vector<32x32xbf16>, vector<16x32xf32> -> vector<16x32xf32>
    %59 = arith.addf %56, %58 : vector<16x32xf32>
    %60 = math.tanh %59 : vector<16x32xf32>
    %cst_22 = arith.constant 1.000000e+00 : f32
    %61 = vector.broadcast %cst_22 : f32 to vector<16x32xf32>
    %62 = arith.subf %61, %53 : vector<16x32xf32>
    %63 = arith.mulf %62, %55 : vector<16x32xf32>
    %64 = arith.addf %42, %63 : vector<16x32xf32>
    %65 = arith.mulf %53, %60 : vector<16x32xf32>
    %66 = arith.addf %64, %65 : vector<16x32xf32>
    %67 = vector.extract_strided_slice %10 {offsets = [32, 0], sizes = [16, 96], strides = [1, 1]} : vector<64x96xf32> to vector<16x96xf32>
    %68 = arith.truncf %63 : vector<16x32xf32> to vector<16x32xbf16>
    %cst_23 = arith.constant dense<0.000000e+00> : vector<16x64xf32>
    %69 = tpu.matmul %68, %17, %cst_23 {dimension_numbers = #tpu.dot_dimension_numbers<[1], [0], [0], [1], [0, 0, 1, 1], [], []>} : vector<16x32xbf16>, vector<32x64xbf16>, vector<16x64xf32> -> vector<16x64xf32>
    %70 = vector.extract_strided_slice %67 {offsets = [0, 0], sizes = [16, 64], strides = [1, 1]} : vector<16x96xf32> to vector<16x64xf32>
    %71 = arith.addf %70, %69 : vector<16x64xf32>
    %72 = arith.negf %71 : vector<16x64xf32>
    %73 = math.exp %72 : vector<16x64xf32>
    %cst_24 = arith.constant 1.000000e+00 : f32
    %74 = vector.broadcast %cst_24 : f32 to vector<16x64xf32>
    %75 = arith.addf %74, %73 : vector<16x64xf32>
    %76 = arith.divf %74, %75 : vector<16x64xf32>
    %77 = vector.extract_strided_slice %76 {offsets = [0, 0], sizes = [16, 32], strides = [1, 1]} : vector<16x64xf32> to vector<16x32xf32>
    %78 = vector.extract_strided_slice %76 {offsets = [0, 32], sizes = [16, 32], strides = [1, 1]} : vector<16x64xf32> to vector<16x32xf32>
    %79 = arith.mulf %78, %63 : vector<16x32xf32>
    %80 = vector.extract_strided_slice %67 {offsets = [0, 64], sizes = [16, 32], strides = [1, 1]} : vector<16x96xf32> to vector<16x32xf32>
    %81 = arith.truncf %79 : vector<16x32xf32> to vector<16x32xbf16>
    %cst_25 = arith.constant dense<0.000000e+00> : vector<16x32xf32>
    %82 = tpu.matmul %81, %18, %cst_25 {dimension_numbers = #tpu.dot_dimension_numbers<[1], [0], [0], [1], [0, 0, 1, 1], [], []>} : vector<16x32xbf16>, vector<32x32xbf16>, vector<16x32xf32> -> vector<16x32xf32>
    %83 = arith.addf %80, %82 : vector<16x32xf32>
    %84 = math.tanh %83 : vector<16x32xf32>
    %cst_26 = arith.constant 1.000000e+00 : f32
    %85 = vector.broadcast %cst_26 : f32 to vector<16x32xf32>
    %86 = arith.subf %85, %77 : vector<16x32xf32>
    %87 = arith.mulf %86, %79 : vector<16x32xf32>
    %88 = arith.addf %66, %87 : vector<16x32xf32>
    %89 = arith.mulf %77, %84 : vector<16x32xf32>
    %90 = arith.addf %88, %89 : vector<16x32xf32>
    %91 = vector.extract_strided_slice %10 {offsets = [48, 0], sizes = [16, 96], strides = [1, 1]} : vector<64x96xf32> to vector<16x96xf32>
    %92 = arith.truncf %87 : vector<16x32xf32> to vector<16x32xbf16>
    %cst_27 = arith.constant dense<0.000000e+00> : vector<16x64xf32>
    %93 = tpu.matmul %92, %17, %cst_27 {dimension_numbers = #tpu.dot_dimension_numbers<[1], [0], [0], [1], [0, 0, 1, 1], [], []>} : vector<16x32xbf16>, vector<32x64xbf16>, vector<16x64xf32> -> vector<16x64xf32>
    %94 = vector.extract_strided_slice %91 {offsets = [0, 0], sizes = [16, 64], strides = [1, 1]} : vector<16x96xf32> to vector<16x64xf32>
    %95 = arith.addf %94, %93 : vector<16x64xf32>
    %96 = arith.negf %95 : vector<16x64xf32>
    %97 = math.exp %96 : vector<16x64xf32>
    %cst_28 = arith.constant 1.000000e+00 : f32
    %98 = vector.broadcast %cst_28 : f32 to vector<16x64xf32>
    %99 = arith.addf %98, %97 : vector<16x64xf32>
    %100 = arith.divf %98, %99 : vector<16x64xf32>
    %101 = vector.extract_strided_slice %100 {offsets = [0, 0], sizes = [16, 32], strides = [1, 1]} : vector<16x64xf32> to vector<16x32xf32>
    %102 = vector.extract_strided_slice %100 {offsets = [0, 32], sizes = [16, 32], strides = [1, 1]} : vector<16x64xf32> to vector<16x32xf32>
    %103 = arith.mulf %102, %87 : vector<16x32xf32>
    %104 = vector.extract_strided_slice %91 {offsets = [0, 64], sizes = [16, 32], strides = [1, 1]} : vector<16x96xf32> to vector<16x32xf32>
    %105 = arith.truncf %103 : vector<16x32xf32> to vector<16x32xbf16>
    %cst_29 = arith.constant dense<0.000000e+00> : vector<16x32xf32>
    %106 = tpu.matmul %105, %18, %cst_29 {dimension_numbers = #tpu.dot_dimension_numbers<[1], [0], [0], [1], [0, 0, 1, 1], [], []>} : vector<16x32xbf16>, vector<32x32xbf16>, vector<16x32xf32> -> vector<16x32xf32>
    %107 = arith.addf %104, %106 : vector<16x32xf32>
    %108 = math.tanh %107 : vector<16x32xf32>
    %cst_30 = arith.constant 1.000000e+00 : f32
    %109 = vector.broadcast %cst_30 : f32 to vector<16x32xf32>
    %110 = arith.subf %109, %101 : vector<16x32xf32>
    %111 = arith.mulf %110, %103 : vector<16x32xf32>
    %112 = arith.addf %90, %111 : vector<16x32xf32>
    %113 = arith.mulf %101, %108 : vector<16x32xf32>
    %114 = arith.addf %112, %113 : vector<16x32xf32>
    %c0_31 = arith.constant 0 : index
    %c0_32 = arith.constant 0 : index
    %115 = vector.load %arg7[%c0_31, %c0_32] : memref<2x16xf32, #tpu.memory_space<vmem>>, vector<2x16xf32>
    %116 = arith.truncf %115 : vector<2x16xf32> to vector<2x16xbf16>
    %117 = arith.truncf %114 : vector<16x32xf32> to vector<16x32xbf16>
    %cst_33 = arith.constant dense<0.000000e+00> : vector<2x32xf32>
    %118 = tpu.matmul %116, %117, %cst_33 {dimension_numbers = #tpu.dot_dimension_numbers<[1], [0], [0], [1], [0, 0, 1, 1], [], []>} : vector<2x16xbf16>, vector<16x32xbf16>, vector<2x32xf32> -> vector<2x32xf32>
    %119 = arith.truncf %118 : vector<2x32xf32> to vector<2x32xbf16>
    %c0_34 = arith.constant 0 : index
    %c0_35 = arith.constant 0 : index
    %120 = vector.load %arg8[%c0_34, %c0_35] : memref<32x128xbf16, #tpu.memory_space<vmem>>, vector<32x128xbf16>
    %cst_36 = arith.constant dense<0.000000e+00> : vector<2x128xf32>
    %121 = tpu.matmul %119, %120, %cst_36 {dimension_numbers = #tpu.dot_dimension_numbers<[1], [0], [0], [1], [0, 0, 1, 1], [], []>} : vector<2x32xbf16>, vector<32x128xbf16>, vector<2x128xf32> -> vector<2x128xf32>
    %c0_37 = arith.constant 0 : index
    %c0_38 = arith.constant 0 : index
    %122 = vector.load %arg9[%c0_37, %c0_38] : memref<1x128xf32, #tpu.memory_space<vmem>>, vector<1x128xf32>
    %123 = vector.broadcast %122 : vector<1x128xf32> to vector<2x128xf32>
    %124 = arith.addf %121, %123 : vector<2x128xf32>
    %c0_39 = arith.constant 0 : index
    %c0_40 = arith.constant 0 : index
    %c0_41 = arith.constant 0 : index
    %125 = vector.load %arg10[%c0_39, %c0_40, %c0_41] : memref<1x2x128xf32, #tpu.memory_space<vmem>>, vector<1x2x128xf32>
    %126 = vector.shape_cast %125 : vector<1x2x128xf32> to vector<2x128xf32>
    %127 = vector.shape_cast %124 : vector<2x128xf32> to vector<1x2x128xf32>
    tpu.vector_store %arg10[%c0_39, %c0_40, %c0_41], %127 {strides = array<i32>} : memref<1x2x128xf32, #tpu.memory_space<vmem>>, vector<1x2x128xf32>,
    return
  }
  func.func @transform_0(%arg0: i32) -> (i32, i32, i32) {
    %c0_i32 = arith.constant 0 : i32
    %c0_i32_0 = arith.constant 0 : i32
    %c0_i32_1 = arith.constant 0 : i32
    return %arg0, %c0_i32, %c0_i32_0 : i32, i32, i32
  }
  func.func @transform_1(%arg0: i32) -> (i32, i32, i32) {
    %c0_i32 = arith.constant 0 : i32
    %c0_i32_0 = arith.constant 0 : i32
    %c0_i32_1 = arith.constant 0 : i32
    return %arg0, %c0_i32, %c0_i32_0 : i32, i32, i32
  }
  func.func @transform_2(%arg0: i32) -> (i32, i32) {
    %c0_i32 = arith.constant 0 : i32
    %c0_i32_0 = arith.constant 0 : i32
    %c0_i32_1 = arith.constant 0 : i32
    return %c0_i32, %c0_i32_0 : i32, i32
  }
  func.func @transform_3(%arg0: i32) -> (i32, i32) {
    %c0_i32 = arith.constant 0 : i32
    %c0_i32_0 = arith.constant 0 : i32
    %c0_i32_1 = arith.constant 0 : i32
    return %c0_i32, %c0_i32_0 : i32, i32
  }
  func.func @transform_4(%arg0: i32) -> (i32, i32) {
    %c0_i32 = arith.constant 0 : i32
    %c0_i32_0 = arith.constant 0 : i32
    %c0_i32_1 = arith.constant 0 : i32
    return %c0_i32, %c0_i32_0 : i32, i32
  }
  func.func @transform_5(%arg0: i32) -> (i32, i32) {
    %c0_i32 = arith.constant 0 : i32
    %c0_i32_0 = arith.constant 0 : i32
    %c0_i32_1 = arith.constant 0 : i32
    return %c0_i32, %c0_i32_0 : i32, i32
  }
  func.func @transform_6(%arg0: i32) -> (i32, i32) {
    %c0_i32 = arith.constant 0 : i32
    %c0_i32_0 = arith.constant 0 : i32
    %c0_i32_1 = arith.constant 0 : i32
    return %c0_i32, %c0_i32_0 : i32, i32
  }
  func.func @transform_7(%arg0: i32) -> (i32, i32) {
    %c0_i32 = arith.constant 0 : i32
    %c0_i32_0 = arith.constant 0 : i32
    %c0_i32_1 = arith.constant 0 : i32
    return %c0_i32, %c0_i32_0 : i32, i32
  }
  func.func @transform_8(%arg0: i32) -> (i32, i32) {
    %c0_i32 = arith.constant 0 : i32
    %c0_i32_0 = arith.constant 0 : i32
    %c0_i32_1 = arith.constant 0 : i32
    return %c0_i32, %c0_i32_0 : i32, i32
  }
  func.func @transform_9(%arg0: i32) -> (i32, i32, i32) {
    %c0_i32 = arith.constant 0 : i32
    %c0_i32_0 = arith.constant 0 : i32
    %c0_i32_1 = arith.constant 0 : i32
    return %arg0, %c0_i32, %c0_i32_0 : i32, i32, i32
  }
}

</mosaic_0001>

<bundles_post_ra>
// kernel: ggru_abide_forward.1
= control target key start
LH: loop header
LB: loop body
LE: loop exit
PB: predicated region body
PF: predicated region fallthrough
CT: control target
= control target key end

     0   :  { %s1788_s30 = smov 0   ;;  %s2093_s0 = inlined_call_operand.vmem [shape: bf16[4,64,32], index: 0, kind: input, shape index: {}]   ;;  %s2094_s1 = inlined_call_operand.vmem [shape: bf16[4,64,64], index: 1, kind: input, shape index: {}]   ;;  %s2095_s2 = inlined_call_operand.vmem [shape: bf16[32,96], index: 2, kind: input, shape index: {}]   ;;  %s2096_s3 = inlined_call_operand.vmem [shape: f32[1,96], index: 3, kind: input, shape index: {}]   ;;  %s2097_s4 = inlined_call_operand.vmem [shape: bf16[32,64], index: 4, kind: input, shape index: {}]   ;;  %s2098_s5 = inlined_call_operand.vmem [shape: bf16[32,32], index: 5, kind: input, shape index: {}]   ;;  %s2099_s6 = inlined_call_operand.vmem [shape: f32[2,16], index: 6, kind: input, shape index: {}]   ;;  %s2100_s7 = inlined_call_operand.vmem [shape: bf16[32,128], index: 7, kind: input, shape index: {}]   ;;  %s2101_s8 = inlined_call_operand.vmem [shape: f32[1,128], index: 8, kind: input, shape index: {}]   ;;  %s2102_s9 = inlined_call_operand.vmem [shape: f32[4,2,128], index: 9, kind: output, shape index: {}]  }
   0x1 LB: > { %s1434_s10 = sadd.s32 4294967295, %s1731_s30   ;;  %p1438_p0 = scmp.ge.s32.totalorder %s1731_s30, 1  ;;  %s1731_s30 = sphi %s1788_s30, %s19_s30  }
   0x2   : > { %p297_p1 = scmp.lt.s32.totalorder %s1731_s30, 5 }
   0x4   : > { %p298_p2 = pnand %p1438_p0, %p297_p1 }
   0x5   : > { %v1661_v0 = vld [vmem:[%s2095_s2] sm:$0xff] (!%p298_p2)   ;;  %p337_p3 = scmp.lt.s32.totalorder (!%p298_p2), %s1434_s10, 3  ;;  %v1662_v1 = vld [vmem:[%s2095_s2 + $0x8] sm:$0xff] (!%p298_p2)   ;;  %vm396_vm0 = vcmask (!%p298_p2), 261120   ;;  %v591_v6 = vlaneseq (!%p298_p2)  ;;  %v1733_v7 = vmov (!%p298_p2), 0.0   ;;  %vm513_vm3 = vcmask (!%p298_p2), 523264  }
   0x6   : > { %301 = sbr.rel (%p298_p2) target bundleno = 2599 (0xa27), region = 56  ;;  %1537 = vmatprep.subr.bf16.mxu0 (!%p298_p2), %v1661_v0  ;;  %v1816_v8 = vld [vmem:[%s2097_s4] sm:$0xff] (!%p298_p2)   ;;  %v1823_v12 = vld [vmem:[%s2097_s4 + $0x8] sm:$0xff] (!%p298_p2)   ;;  %vm1734_vm4 = vmmov (!%p298_p2), 0   ;;  %s1735_s26 = smov (!%p298_p2), 32   ;;  %vm1257_vm5 = vcmask (!%p298_p2), 130048  }
   0x7   : > { %1538 = vmatpush3.bf16.msra.mxu0 (!%p298_p2), %v1661_v0  ;;  %v592_v9 = vshrl.u32 (!%p298_p2), %v591_v6, 7  ;;  %v595_v11 = vand.u32 (!%p298_p2), 127, %v591_v6  ;;  %v1858_v37 = vld [vmem:[%s2096_s3] ss:$0 sm:$0xff] (!%p298_p2)  ;;  %s1736_s29 = smov (!%p298_p2), 96  }
   0x8   : > { %1539 = vmatprep.subr.bf16.mxu0 (!%p298_p2), %v1662_v1 }
   0x9   : > { %v593_v10 = vadd.s32 (!%p298_p2), 8, %v592_v9  ;;  %vm596_vm1 = vcmp.eq.s32.totalorder (!%p298_p2), %v592_v9, %v595_v11 }
   0xa   : > { %v1463_v14 = vsel (!%p298_p2), %vm596_vm1, 1.0, %v1733_v7 }
   0xb   : > { %1540 = vmatpush3.bf16.msra.mxu0 (!%p298_p2), %v1662_v1  ;;  %vm597_vm2 = vcmp.eq.s32.totalorder (!%p298_p2), %v593_v10, %v595_v11 }
   0xc   : > { %1565 = vmatprep.subr.bf16.mxu0 (!%p298_p2), %v1733_v7  ;;  %v1464_v15 = vsel (!%p298_p2), %vm597_vm2, 1.0, %v1733_v7 }
   0xd   : > { %s2104_s10 = smov (!%p337_p3, %s1434_s10), 3  ;;  %v610_v16 = vpack.c.bf16 %v1464_v15, %v1463_v14  ;;  %v1656_v17 = vpack.i.bf16 %v1464_v15, %v1463_v14 }
   0xe   : > { %s1492_s15 = sshll.u32 %s2104_s10, 5  ;;  %s1443_s22 = sshll.u32 %s2104_s10, 1 }
   0xf   : > { %s341_s18 = scalar_lea.vmem %s2093_s0, %s1492_s15  ;;  %s1828_s25 = scalar_lea.vmem %s2094_s1, %s1492_s15  ;;  %1657 = vrot.lane.b32.xlu0 %v1656_v17, %s1735_s26 }
  0x10   : > { %v1663_v2 = vld [vmem:[%s341_s18] sm:$0xff]   ;;  %v1664_v3 = vld [vmem:[%s341_s18 + $0x8] sm:$0xff]   ;;  %v1665_v4 = vld [vmem:[%s341_s18 + $0x10] sm:$0xff]   ;;  %s1737_s15 = smov 64   ;;  %s350_s27 = scalar_lea.vmem %s2102_s9, %s1443_s22 }
  0x11   : > { %1541 = vmatprep.mubr.msk.bf16.mxu0 %vm396_vm0, %v1663_v2  ;;  %v1666_v5 = vld [vmem:[%s341_s18 + $0x18] sm:$0xff]   ;;  %v1669_v13 = vld [vmem:[%s1828_s25] sm:$0xff]   ;;  %v1670_v30 = vld [vmem:[%s1828_s25 + $0x8] sm:$0xff]  }
  0x12   : > { %1542 = vmatmul.mubr.msk.bf16.vlgmr.msra.gmra.mrb[0].mxu0 %vm396_vm0, %v1664_v3  ;;  %1557 = vmatprep.mubr.msk.bf16.mxu1 %vm513_vm3, %v1669_v13  ;;  %v1671_v35 = vld [vmem:[%s1828_s25 + $0x10] sm:$0xff]   ;;  %v1672_v36 = vld [vmem:[%s1828_s25 + $0x18] sm:$0xff]  }
  0x13   : > { %1545 = vmatprep.mubr.msk.bf16.mxu0 %vm396_vm0, %v1665_v4  ;;  %1566 = vmatpush3.bf16.msra.mxu0 %v1816_v8 }
  0x14   : > { %1567 = vmatprep.subr.bf16.mxu0 %v1733_v7 }
  0x17   : > { %1568 = vmatpush3.bf16.msra.mxu0 %v1823_v12 }
  0x18   : > { %1573 = vmatprep.subr.bf16.mxu0 %v1733_v7 }
  0x1a   : > { %1546 = vmatmul.mubr.msk.bf16.gmra.mrb[4].mxu0 %vm396_vm0, %v1666_v5 }
  0x1b   : > { %1569 = vmatprep.mubr.msk.bf16.mxu0 %vm1734_vm4, %v1733_v7 }
  0x22   : > { %1570 = vmatmul.mubr.msk.bf16.vlgmr.msra.gmra.mrb[8].mxu0 %vm396_vm0, %v610_v16 }
  0x23   : > { %1577 = vmatprep.mubr.msk.bf16.mxu0 %vm1734_vm4, %v1733_v7 }
  0x81   : > { %v1658_v52 = vpop.permute.xlu0 %1657 }
  0x82   : > { %v1659_v53 = vunpack.i.l.bf16 %v1658_v52  ;;  %v1660_v54 = vunpack.i.h.bf16 %v1658_v52 }
  0xe5   : > { %v1543_v18 = vpop.f32.mrb[0].mxu0 }
  0xe6   : > { %v443_v19 = vpop.f32.mrb[1].mxu0 }
  0xe7   : > { %v1544_v20 = vpop.f32.mrb[2].mxu0 }
  0xe8   : > { %v483_v21 = vpack.c.bf16 %v1544_v20, %v1543_v18  ;;  %v446_v22 = vpop.f32.mrb[3].mxu0 }
  0xe9   : > { %v482_v23 = vpack.c.bf16 %v446_v22, %v443_v19 }
  0xeb   : > { %1549 = vmatprep.subr.bf16.mxu1 %v482_v23 }
  0xec   : > { %1550 = vmatpush3.bf16.msra.mxu1 %v482_v23 }
  0xed   : > { %v1547_v24 = vpop.f32.mrb[4].mxu0  ;;  %1551 = vmatprep.subr.bf16.mxu1 %v483_v21 }
  0xee   : > { %v459_v25 = vpop.f32.mrb[5].mxu0 }
  0xef   : > { %v1548_v26 = vpop.f32.mrb[6].mxu0 }
  0xf0   : > { %v485_v27 = vpack.c.bf16 %v1548_v26, %v1547_v24  ;;  %v462_v28 = vpop.f32.mrb[7].mxu0  ;;  %1552 = vmatpush3.bf16.msra.mxu1 %v483_v21 }
  0xf1   : > { %v484_v29 = vpack.c.bf16 %v462_v28, %v459_v25 }
  0xf3   : > { %1553 = vmatprep.subr.bf16.mxu1 %v484_v29 }
  0xf4   : > { %1554 = vmatpush3.bf16.msra.mxu1 %v484_v29 }
  0xf5   : > { %1555 = vmatprep.subr.bf16.mxu1 %v485_v27  ;;  %v660_v31 = vpop.f32.mrb[8].mxu0 }
  0xf6   : > { %v1571_v32 = vpop.f32.mrb[9].mxu0 }
  0xf7   : > { %v663_v33 = vpop.f32.mrb[10].mxu0 }
  0xf8   : > { %1556 = vmatpush3.bf16.msra.mxu1 %v485_v27  ;;  %v1572_v34 = vpop.f32.mrb[11].mxu0 }
  0xf9   : > { %1581 = vmatprep.subr.bf16.mxu1 %v1733_v7 }
  0xfb   : > { %1558 = vmatmul.mubr.msk.bf16.vlgmr.msra.gmra.mrb[0].mxu1 %vm513_vm3, %v1670_v30 }
  0xfc   : > { %1582 = vmatpush3.bf16.msra.mxu1 %v1816_v8  ;;  %1561 = vmatprep.mubr.msk.bf16.mxu1 %vm513_vm3, %v1671_v35 }
  0xfd   : > { %1583 = vmatprep.subr.bf16.mxu1 %v1733_v7 }
 0x100   : > { %1584 = vmatpush3.bf16.msra.mxu1 %v1823_v12 }
 0x101   : > { %1597 = vmatprep.subr.bf16.mxu1 %v1733_v7 }
 0x103   : > { %1562 = vmatmul.mubr.msk.bf16.gmra.mrb[4].mxu1 %vm513_vm3, %v1672_v36 }
 0x104   : > { %1585 = vmatprep.mubr.msk.bf16.mxu1 %vm1734_vm4, %v1733_v7 }
 0x1ce   : > { %v1559_v38 = vpop.f32.mrb[0].mxu1 }
 0x1cf   : > { %v560_v39 = vpop.f32.mrb[1].mxu1  ;;  %v1908_v9 = vadd.f32 %v1559_v38, %v1858_v37 }
 0x1d0   : > { %v1861_v40 = vadd.f32 %v1858_v37, %v560_v39  ;;  %v1560_v41 = vpop.f32.mrb[2].mxu1 }
 0x1d1   : > { %v563_v42 = vpop.f32.mrb[3].mxu1  ;;  %v1911_v11 = vadd.f32 %v1560_v41, %v1858_v37 }
 0x1d2   : > { %v667_v43 = vadd.f32 %v660_v31, %v1861_v40  ;;  %v1865_v44 = vadd.f32 %v1858_v37, %v563_v42 }
 0x1d4   : > { %v1468_v45 = vmul.f32 -1.442695, %v667_v43  ;;  %v668_v46 = vadd.f32 %v663_v33, %v1865_v44 }
 0x1d6   : > { %1677 = vpow2.f32 %v1468_v45  ;;  %v1469_v47 = vmul.f32 -1.442695, %v668_v46  ;;  %v1884_v60 = vpop.f32.mrb[4].mxu1 }
 0x1d7   : > { %v576_v61 = vpop.f32.mrb[5].mxu1 }
 0x1d8   : > { %1679 = vpow2.f32 %v1469_v47  ;;  %v1886_v62 = vpop.f32.mrb[6].mxu1  ;;  %v1951_v39 = vadd.f32 %v1858_v37, %v576_v61  ;;  %v1673_v61 = vld [vmem:[%s2098_s5] sm:$0xff]  }
 0x1d9   : > { %v579_v63 = vpop.f32.mrb[7].mxu1  ;;  %1574 = vmatpush3.bf16.msra.mxu0 %v1673_v61 }
 0x1da   : > { %v1954_v42 = vadd.f32 %v1858_v37, %v579_v63  ;;  %1575 = vmatprep.subr.bf16.mxu0 %v1733_v7 }
 0x1e0   : > { %v1678_v48 = vpop.eup %1677 }
 0x1e1   : > { %v675_v49 = vadd.f32 1.0, %v1678_v48 }
 0x1e2   : > { %v1680_v50 = vpop.eup %1679 }
 0x1e3   : > { %1681 = vrcp.f32 %v675_v49  ;;  %v676_v51 = vadd.f32 1.0, %v1680_v50 }
 0x1e5   : > { %1683 = vrcp.f32 %v676_v51 }
 0x1ed   : > { %v1868_v55 = vpop.eup %1681 }
 0x1ee   : > { %v1871_v56 = vmul.f32 %v1868_v55, %v1659_v53  ;;  %v763_v0 = vsub.f32 1.0, %v1868_v55 }
 0x1ef   : > { %v1873_v57 = vpop.eup %1683 }
 0x1f0   : > { %767 = vrot.lane.b32.xlu0 %v1871_v56, %s1736_s29  ;;  %v1878_v58 = vmul.f32 %v1873_v57, %v1660_v54  ;;  %v764_v3 = vsub.f32 1.0, %v1873_v57 }
 0x1f2   : > { %769 = vrot.lane.b32.xlu1 %v1878_v58, %s1736_s29  ;;  %v691_v59 = vpack.c.bf16 %v1878_v58, %v1871_v56 }
 0x262   : > { %v768_v1 = vpop.permute.xlu0 %767 }
 0x263   : > { %v1889_v2 = vmul.f32 %v768_v1, %v763_v0 }
 0x264   : > { %v770_v4 = vpop.permute.xlu1 %769 }
 0x265   : > { %v1892_v5 = vmul.f32 %v770_v4, %v764_v3  ;;  %850 = vrot.lane.b32.xlu1 %v1889_v2, %s1735_s26 }
 0x267   : > { %v789_v6 = vpack.c.bf16 %v1892_v5, %v1889_v2  ;;  %852 = vrot.lane.b32.xlu0 %v1892_v5, %s1735_s26 }
 0x269   : > { %1586 = vmatmul.mubr.msk.bf16.vlgmr.msra.gmra.mrb[8].mxu1 %vm396_vm0, %v789_v6  ;;  %v1674_v6 = vld [vmem:[%s2098_s5 + $0x8] sm:$0xff]  }
 0x26a   : > { %1598 = vmatpush3.bf16.msra.mxu1 %v1816_v8  ;;  %1601 = vmatprep.mubr.msk.bf16.mxu1 %vm1734_vm4, %v1733_v7 }
 0x26b   : > { %1599 = vmatprep.subr.bf16.mxu1 %v1733_v7  ;;  %1576 = vmatpush3.bf16.msra.mxu0 %v1674_v6 }
 0x26c   : > { %1589 = vmatprep.subr.bf16.mxu0 %v1733_v7 }
 0x26e   : > { %1600 = vmatpush3.bf16.msra.mxu1 %v1823_v12 }
 0x26f   : > { %1613 = vmatprep.subr.bf16.mxu1 %v1733_v7 }
 0x2d7   : > { %v851_v25 = vpop.permute.xlu1 %850 }
 0x2d9   : > { %v853_v28 = vpop.permute.xlu0 %852 }
 0x33c   : > { %v827_v10 = vpop.f32.mrb[8].mxu1 }
 0x33d   : > { %v834_v13 = vadd.f32 %v827_v10, %v1908_v9  ;;  %v1587_v14 = vpop.f32.mrb[9].mxu1 }
 0x33e   : > { %v830_v15 = vpop.f32.mrb[10].mxu1 }
 0x33f   : > { %v1474_v16 = vmul.f32 -1.442695, %v834_v13  ;;  %v835_v17 = vadd.f32 %v830_v15, %v1911_v11  ;;  %v1588_v18 = vpop.f32.mrb[11].mxu1 }
 0x341   : > { %1685 = vpow2.f32 %v1474_v16  ;;  %v1475_v19 = vmul.f32 -1.442695, %v835_v17 }
 0x343   : > { %1687 = vpow2.f32 %v1475_v19 }
 0x34b   : > { %v1686_v20 = vpop.eup %1685 }
 0x34c   : > { %v842_v21 = vadd.f32 1.0, %v1686_v20 }
 0x34d   : > { %v1688_v22 = vpop.eup %1687 }
 0x34e   : > { %1689 = vrcp.f32 %v842_v21  ;;  %v843_v23 = vadd.f32 1.0, %v1688_v22 }
 0x350   : > { %1691 = vrcp.f32 %v843_v23  ;;  %v2016_v23 = vadd.f32 %v1886_v62, %v1858_v37 }
 0x358   : > { %v1915_v24 = vpop.eup %1689 }
 0x359   : > { %v1918_v26 = vmul.f32 %v1915_v24, %v851_v25  ;;  %v918_v31 = vsub.f32 1.0, %v1915_v24 }
 0x35a   : > { %v1920_v27 = vpop.eup %1691 }
 0x35b   : > { %922 = vrot.lane.b32.xlu1 %v1918_v26, %s1736_s29  ;;  %v1925_v29 = vmul.f32 %v1920_v27, %v853_v28  ;;  %v919_v34 = vsub.f32 1.0, %v1920_v27 }
 0x35d   : > { %924 = vrot.lane.b32.xlu0 %v1925_v29, %s1736_s29  ;;  %v858_v30 = vpack.c.bf16 %v1925_v29, %v1918_v26 }
 0x3cd   : > { %v923_v32 = vpop.permute.xlu1 %922 }
 0x3ce   : > { %v1932_v33 = vmul.f32 %v923_v32, %v918_v31 }
 0x3cf   : > { %v925_v35 = vpop.permute.xlu0 %924 }
 0x3d0   : > { %v1935_v36 = vmul.f32 %v925_v35, %v919_v34  ;;  %1005 = vrot.lane.b32.xlu1 %v1932_v33, %s1735_s26 }
 0x3d2   : > { %v944_v38 = vpack.c.bf16 %v1935_v36, %v1932_v33  ;;  %1007 = vrot.lane.b32.xlu0 %v1935_v36, %s1735_s26 }
 0x3d4   : > { %1602 = vmatmul.mubr.msk.bf16.vlgmr.msra.gmra.mrb[12].mxu1 %vm396_vm0, %v944_v38 }
 0x3d5   : > { %1614 = vmatpush3.bf16.msra.mxu1 %v1816_v8  ;;  %1617 = vmatprep.mubr.msk.bf16.mxu1 %vm1734_vm4, %v1733_v7 }
 0x3d6   : > { %1615 = vmatprep.subr.bf16.mxu1 %v1733_v7 }
 0x3d9   : > { %1616 = vmatpush3.bf16.msra.mxu1 %v1823_v12 }
 0x3da   : > { %1629 = vmatprep.subr.bf16.mxu1 %v1733_v7 }
 0x442   : > { %v1006_v54 = vpop.permute.xlu1 %1005 }
 0x444   : > { %v1008_v1 = vpop.permute.xlu0 %1007 }
 0x4a7   : > { %v982_v41 = vpop.f32.mrb[12].mxu1 }
 0x4a8   : > { %v989_v43 = vadd.f32 %v982_v41, %v1951_v39  ;;  %v1603_v45 = vpop.f32.mrb[13].mxu1 }
 0x4a9   : > { %v985_v8 = vpop.f32.mrb[14].mxu1 }
 0x4aa   : > { %v1478_v46 = vmul.f32 -1.442695, %v989_v43  ;;  %v990_v47 = vadd.f32 %v985_v8, %v1954_v42  ;;  %v1604_v48 = vpop.f32.mrb[15].mxu1 }
 0x4ac   : > { %1693 = vpow2.f32 %v1478_v46  ;;  %v1479_v49 = vmul.f32 -1.442695, %v990_v47 }
 0x4ae   : > { %1695 = vpow2.f32 %v1479_v49 }
 0x4b6   : > { %v1694_v12 = vpop.eup %1693 }
 0x4b7   : > { %v997_v50 = vadd.f32 1.0, %v1694_v12 }
 0x4b8   : > { %v1696_v51 = vpop.eup %1695 }
 0x4b9   : > { %1697 = vrcp.f32 %v997_v50  ;;  %v998_v52 = vadd.f32 1.0, %v1696_v51 }
 0x4bb   : > { %1699 = vrcp.f32 %v998_v52 }
 0x4c3   : > { %v1958_v53 = vpop.eup %1697 }
 0x4c4   : > { %v1011_v63 = vmul.f32 %v1958_v53, %v1006_v54  ;;  %v1073_v10 = vsub.f32 1.0, %v1958_v53 }
 0x4c5   : > { %v1964_v0 = vpop.eup %1699 }
 0x4c6   : > { %1077 = vrot.lane.b32.xlu1 %v1011_v63, %s1736_s29  ;;  %v1012_v3 = vmul.f32 %v1964_v0, %v1008_v1  ;;  %v1074_v15 = vsub.f32 1.0, %v1964_v0 }
 0x4c8   : > { %1079 = vrot.lane.b32.xlu0 %v1012_v3, %s1736_s29  ;;  %v1013_v4 = vpack.c.bf16 %v1012_v3, %v1011_v63 }
 0x538   : > { %v1078_v13 = vpop.permute.xlu1 %1077 }
 0x539   : > { %v1975_v14 = vmul.f32 %v1078_v13, %v1073_v10 }
 0x53a   : > { %v1080_v16 = vpop.permute.xlu0 %1079 }
 0x53b   : > { %v1978_v17 = vmul.f32 %v1080_v16, %v1074_v15  ;;  %1160 = vrot.lane.b32.xlu1 %v1975_v14, %s1735_s26 }
 0x53d   : > { %v1099_v18 = vpack.c.bf16 %v1978_v17, %v1975_v14  ;;  %1162 = vrot.lane.b32.xlu0 %v1978_v17, %s1735_s26 }
 0x53f   : > { %1618 = vmatmul.mubr.msk.bf16.vlgmr.msra.gmra.mrb[16].mxu1 %vm396_vm0, %v1099_v18  ;;  %693 = vrot.lane.b32.xlu1 %v691_v59, %s1736_s29  ;;  %v2012_v59 = vadd.f32 %v1884_v60, %v1858_v37 }
 0x540   : > { %1631 = vmatprep.mubr.msk.bf16.mxu1 %vm1734_vm4, %v1733_v7 }
 0x541   : > { %860 = vrot.lane.b32.xlu0 %v858_v30, %s1736_s29 }
 0x543   : > { %1015 = vrot.lane.b32.xlu1 %v1013_v4, %s1736_s29 }
 0x5ad   : > { %v1161_v19 = vpop.permute.xlu1 %1160 }
 0x5af   : > { %v1163_v21 = vpop.permute.xlu0 %1162 }
 0x5b1   : > { %v694_v20 = vpop.permute.xlu1 %693 }
 0x5b2   : > { %1578 = vmatmul.mubr.msk.bf16.vlgmr.msra.gmra.mrb[12].mxu0 %vm396_vm0, %v694_v20 }
 0x5b3   : > { %1590 = vmatpush3.bf16.msra.mxu0 %v1673_v61  ;;  %1593 = vmatprep.mubr.msk.bf16.mxu0 %vm1734_vm4, %v1733_v7  ;;  %v861_v56 = vpop.permute.xlu0 %860 }
 0x5b4   : > { %1591 = vmatprep.subr.bf16.mxu0 %v1733_v7 }
 0x5b5   : > { %v1016_v58 = vpop.permute.xlu1 %1015 }
 0x5b7   : > { %1592 = vmatpush3.bf16.msra.mxu0 %v1674_v6 }
 0x5b8   : > { %1605 = vmatprep.subr.bf16.mxu0 %v1733_v7 }
 0x5ba   : > { %1594 = vmatmul.mubr.msk.bf16.vlgmr.msra.gmra.mrb[16].mxu0 %vm396_vm0, %v861_v56 }
 0x5bb   : > { %1606 = vmatpush3.bf16.msra.mxu0 %v1673_v61  ;;  %1609 = vmatprep.mubr.msk.bf16.mxu0 %vm1734_vm4, %v1733_v7 }
 0x5bc   : > { %1607 = vmatprep.subr.bf16.mxu0 %v1733_v7 }
 0x5bf   : > { %1608 = vmatpush3.bf16.msra.mxu0 %v1674_v6 }
 0x5c0   : > { %1621 = vmatprep.subr.bf16.mxu0 %v1733_v7 }
 0x5c2   : > { %1610 = vmatmul.mubr.msk.bf16.vlgmr.msra.gmra.mrb[20].mxu0 %vm396_vm0, %v1016_v58 }
 0x5c3   : > { %1622 = vmatpush3.bf16.msra.mxu0 %v1673_v61  ;;  %1625 = vmatprep.mubr.msk.bf16.mxu0 %vm1734_vm4, %v1733_v7 }
 0x5c4   : > { %1623 = vmatprep.subr.bf16.mxu0 %v1733_v7 }
 0x5c7   : > { %1624 = vmatpush3.bf16.msra.mxu0 %v1674_v6 }
 0x5c8   : > { %1635 = vmatprep.subr.bf16.mxu0 %v1733_v7 }
 0x612   : > { %v1137_v22 = vpop.f32.mrb[16].mxu1 }
 0x613   : > { %v1144_v25 = vadd.f32 %v1137_v22, %v2012_v59  ;;  %v1619_v26 = vpop.f32.mrb[17].mxu1 }
 0x614   : > { %v1140_v28 = vpop.f32.mrb[18].mxu1 }
 0x615   : > { %v1482_v29 = vmul.f32 -1.442695, %v1144_v25  ;;  %v1145_v30 = vadd.f32 %v1140_v28, %v2016_v23  ;;  %v1620_v31 = vpop.f32.mrb[19].mxu1 }
 0x617   : > { %1701 = vpow2.f32 %v1482_v29  ;;  %v1483_v32 = vmul.f32 -1.442695, %v1145_v30 }
 0x619   : > { %1703 = vpow2.f32 %v1483_v32  ;;  %v1675_v32 = vld [vmem:[%s2100_s7] sm:$0xff]  }
 0x621   : > { %v1702_v34 = vpop.eup %1701 }
 0x622   : > { %v1152_v35 = vadd.f32 1.0, %v1702_v34 }
 0x623   : > { %v1704_v60 = vpop.eup %1703 }
 0x624   : > { %1705 = vrcp.f32 %v1152_v35  ;;  %v1153_v38 = vadd.f32 1.0, %v1704_v60 }
 0x626   : > { %1707 = vrcp.f32 %v1153_v38 }
 0x62e   : > { %v2020_v41 = vpop.eup %1705 }
 0x62f   : > { %v1166_v62 = vmul.f32 %v2020_v41, %v1161_v19 }
 0x630   : > { %v2022_v37 = vpop.eup %1707 }
 0x631   : > { %v1167_v43 = vmul.f32 %v2022_v37, %v1163_v21 }
 0x633   : > { %v1168_v45 = vpack.c.bf16 %v1167_v43, %v1166_v62 }
 0x635   : > { %1170 = vrot.lane.b32.xlu0 %v1168_v45, %s1736_s29 }
 0x685   : > { %v744_v8 = vpop.f32.mrb[12].mxu0 }
 0x686   : > { %753 = vrot.lane.b32.xlu1 %v744_v8, %s1737_s15  ;;  %v1579_v46 = vpop.f32.mrb[13].mxu0 }
 0x687   : > { %v747_v47 = vpop.f32.mrb[14].mxu0 }
 0x688   : > { %755 = vrot.lane.b32.xlu0 %v747_v47, %s1737_s15  ;;  %v1580_v48 = vpop.f32.mrb[15].mxu0 }
 0x68d   : > { %v899_v49 = vpop.f32.mrb[16].mxu0 }
 0x68e   : > { %908 = vrot.lane.b32.xlu1 %v899_v49, %s1737_s15  ;;  %v1595_v12 = vpop.f32.mrb[17].mxu0 }
 0x68f   : > { %v902_v50 = vpop.f32.mrb[18].mxu0 }
 0x690   : > { %910 = vrot.lane.b32.xlu0 %v902_v50, %s1737_s15  ;;  %v1596_v51 = vpop.f32.mrb[19].mxu0 }
 0x695   : > { %v1054_v52 = vpop.f32.mrb[20].mxu0 }
 0x696   : > { %1063 = vrot.lane.b32.xlu1 %v1054_v52, %s1737_s15  ;;  %v1611_v54 = vpop.f32.mrb[21].mxu0  ;;  %v1229_v52 = vsub.f32 1.0, %v2022_v37 }
 0x697   : > { %v1057_v61 = vpop.f32.mrb[22].mxu0 }
 0x698   : > { %1065 = vrot.lane.b32.xlu0 %v1057_v61, %s1737_s15  ;;  %v1612_v63 = vpop.f32.mrb[23].mxu0 }
 0x6a7   : > { %v1171_v1 = vpop.permute.xlu0 %1170 }
 0x6a8   : > { %1626 = vmatmul.mubr.msk.bf16.vlgmr.msra.gmra.mrb[24].mxu0 %vm396_vm0, %v1171_v1 }
 0x6a9   : > { %1639 = vmatprep.mubr.msk.bf16.mxu0 %vm1734_vm4, %v1733_v7  ;;  %1636 = vmatpush3.bf16.msra.mxu0 %v1675_v32 }
 0x6aa   : > { %1637 = vmatprep.subr.bf16.mxu0 %v1733_v7 }
 0x6f8   : > { %v754_v3 = vpop.permute.xlu1 %753 }
 0x6f9   : > { %v759_v6 = vadd.f32 %v754_v3, %v1861_v40 }
 0x6fa   : > { %v756_v4 = vpop.permute.xlu0 %755 }
 0x6fb   : > { %v760_v13 = vadd.f32 %v756_v4, %v1865_v44  ;;  %1709 = vtanh.f32 %v759_v6 }
 0x6fd   : > { %1711 = vtanh.f32 %v760_v13 }
 0x700   : > { %v909_v10 = vpop.permute.xlu1 %908 }
 0x701   : > { %v914_v16 = vadd.f32 %v909_v10, %v1908_v9 }
 0x702   : > { %v911_v15 = vpop.permute.xlu0 %910 }
 0x703   : > { %v915_v19 = vadd.f32 %v911_v15, %v1911_v11  ;;  %1713 = vtanh.f32 %v914_v16 }
 0x705   : > { %1715 = vtanh.f32 %v915_v19  ;;  %v1710_v22 = vpop.eup %1709 }
 0x707   : > { %v1712_v11 = vpop.eup %1711 }
 0x708   : > { %v1064_v18 = vpop.permute.xlu1 %1063 }
 0x709   : > { %v1069_v21 = vadd.f32 %v1064_v18, %v1951_v39 }
 0x70a   : > { %v1066_v20 = vpop.permute.xlu0 %1065 }
 0x70b   : > { %v1070_v56 = vadd.f32 %v1066_v20, %v1954_v42  ;;  %1717 = vtanh.f32 %v1069_v21  ;;  %v1486_v21 = vld [vmem:[%s2101_s8] ss:$0 sm:$0xff] }
 0x70d   : > { %1719 = vtanh.f32 %v1070_v56  ;;  %v1714_v39 = vpop.eup %1713 }
 0x70f   : > { %v1716_v42 = vpop.eup %1715 }
 0x715   : > { %v1718_v25 = vpop.eup %1717 }
 0x717   : > { %v1720_v26 = vpop.eup %1719 }
 0x77b   : > { %v1209_v58 = vpop.f32.mrb[24].mxu0 }
 0x77c   : > { %1218 = vrot.lane.b32.xlu1 %v1209_v58, %s1737_s15  ;;  %v1627_v40 = vpop.f32.mrb[25].mxu0 }
 0x77d   : > { %v1212_v44 = vpop.f32.mrb[26].mxu0 }
 0x77e   : > { %1220 = vrot.lane.b32.xlu0 %v1212_v44, %s1737_s15  ;;  %v1628_v9 = vpop.f32.mrb[27].mxu0 }
 0x780   : > { %779 = vrot.lane.b32.xlu1 %v1710_v22, %s1737_s15 }
 0x782   : > { %781 = vrot.lane.b32.xlu0 %v1712_v11, %s1737_s15 }
 0x784   : > { %934 = vrot.lane.b32.xlu1 %v1714_v39, %s1737_s15 }
 0x786   : > { %936 = vrot.lane.b32.xlu0 %v1716_v42, %s1737_s15 }
 0x788   : > { %1089 = vrot.lane.b32.xlu1 %v1718_v25, %s1737_s15 }
 0x78a   : > { %1091 = vrot.lane.b32.xlu0 %v1720_v26, %s1737_s15 }
 0x78c   : > { %1232 = vrot.lane.b32.xlu1 %v1166_v62, %s1736_s29 }
 0x78e   : > { %1234 = vrot.lane.b32.xlu0 %v1167_v43, %s1736_s29 }
 0x7ee   : > { %v1219_v28 = vpop.permute.xlu1 %1218 }
 0x7ef   : > { %v1224_v29 = vadd.f32 %v1219_v28, %v2012_v59 }
 0x7f0   : > { %v1221_v30 = vpop.permute.xlu0 %1220 }
 0x7f1   : > { %1721 = vtanh.f32 %v1224_v29  ;;  %v1225_v31 = vadd.f32 %v1221_v30, %v2016_v23 }
 0x7f2   : > { %v780_v60 = vpop.permute.xlu1 %779 }
 0x7f3   : > { %1723 = vtanh.f32 %v1225_v31  ;;  %v785_v38 = vmul.f32 %v1868_v55, %v780_v60 }
 0x7f4   : > { %v782_v59 = vpop.permute.xlu0 %781 }
 0x7f5   : > { %v786_v23 = vmul.f32 %v1873_v57, %v782_v59  ;;  %v787_v45 = vadd.f32 %v785_v38, %v1889_v2  ;;  %v1228_v57 = vsub.f32 1.0, %v2020_v41 }
 0x7f6   : > { %v935_v62 = vpop.permute.xlu1 %934 }
 0x7f7   : > { %v788_v8 = vadd.f32 %v786_v23, %v1892_v5  ;;  %v930_v46 = vadd.f32 %v1932_v33, %v787_v45  ;;  %v940_v47 = vmul.f32 %v1915_v24, %v935_v62 }
 0x7f8   : > { %v937_v43 = vpop.permute.xlu0 %936 }
 0x7f9   : > { %v931_v7 = vadd.f32 %v1935_v36, %v788_v8  ;;  %v941_v48 = vmul.f32 %v1920_v27, %v937_v43  ;;  %v942_v50 = vadd.f32 %v940_v47, %v930_v46 }
 0x7fa   : > { %v1090_v49 = vpop.permute.xlu1 %1089 }
 0x7fb   : > { %v1722_v34 = vpop.eup %1721  ;;  %v943_v55 = vadd.f32 %v941_v48, %v931_v7  ;;  %v1085_v5 = vadd.f32 %v1975_v14, %v942_v50  ;;  %v1095_v33 = vmul.f32 %v1958_v53, %v1090_v49  ;;  %v1254_v53 = vld [vmem:[%s2099_s6] sm:$0x3] }
 0x7fc   : > { %1244 = vrot.lane.b32.xlu1 %v1722_v34, %s1737_s15  ;;  %v1092_v12 = vpop.permute.xlu0 %1091 }
 0x7fd   : > { %v1724_v35 = vpop.eup %1723  ;;  %v1086_v24 = vadd.f32 %v1978_v17, %v943_v55  ;;  %v1096_v36 = vmul.f32 %v1964_v0, %v1092_v12  ;;  %v1097_v63 = vadd.f32 %v1095_v33, %v1085_v5  ;;  %v1255_v17 = vpack.c.bf16 %v1254_v53, %v1254_v53 }
 0x7fe   : > { %1246 = vrot.lane.b32.xlu0 %v1724_v35, %s1737_s15  ;;  %v1233_v51 = vpop.permute.xlu1 %1232 }
 0x7ff   : > { %v1238_v54 = vmul.f32 %v1233_v51, %v1228_v57  ;;  %v1098_v1 = vadd.f32 %v1096_v36, %v1086_v24 }
 0x800   : > { %v1235_v2 = vpop.permute.xlu0 %1234 }
 0x801   : > { %v1239_v27 = vmul.f32 %v1235_v2, %v1229_v52  ;;  %v1240_v6 = vadd.f32 %v1238_v54, %v1097_v63 }
 0x803   : > { %v1241_v10 = vadd.f32 %v1239_v27, %v1098_v1 }
 0x86e   : > { %v1245_v61 = vpop.permute.xlu1 %1244 }
 0x86f   : > { %v1250_v3 = vmul.f32 %v2020_v41, %v1245_v61  ;;  %v1676_v41 = vld [vmem:[%s2100_s7 + $0x8] sm:$0xff]  }
 0x870   : > { %v1247_v4 = vpop.permute.xlu0 %1246  ;;  %1638 = vmatpush3.bf16.msra.mxu0 %v1676_v41 }
 0x871   : > { %v1251_v13 = vmul.f32 %v2022_v37, %v1247_v4  ;;  %v1252_v15 = vadd.f32 %v1250_v3, %v1240_v6 }
 0x873   : > { %v1253_v14 = vadd.f32 %v1251_v13, %v1241_v10 }
 0x875   : > { %v1256_v0 = vpack.c.bf16 %v1253_v14, %v1252_v15 }
 0x877   : > { %1630 = vmatpush3.bf16.msra.mxu1 %v1256_v0 }
 0x87a   : > { %1632 = vmatmul.mubr.msk.bf16.vlgmr.msra.gmra.mrb[20].mxu1 %vm1257_vm5, %v1255_v17 }
 0x94d   : > { %v1295_v16 = vpop.f32.mrb[20].mxu1 }
 0x94e   : > { %v1301_v18 = vpack.c.bf16 %v1295_v16, %v1295_v16  ;;  %v1633_v37 = vpop.f32.mrb[21].mxu1 }
 0x94f   : > { %v1298_v19 = vpop.f32.mrb[22].mxu1 }
 0x950   : > { %v1634_v20 = vpop.f32.mrb[23].mxu1  ;;  %1640 = vmatmul.mubr.msk.bf16.vlgmr.msra.gmra.mrb[28].mxu0 %vm396_vm0, %v1301_v18 }
 0xa23   : > { %v1362_v56 = vpop.f32.mrb[28].mxu0 }
 0xa24   : > { %v1363_v58 = vadd.f32 %v1486_v21, %v1362_v56  ;;  %v1641_v40 = vpop.f32.mrb[29].mxu0 }
 0xa25   : > { %v1365_v44 = vpop.f32.mrb[30].mxu0 }
 0xa26   : > { %1368 = vst [vmem:[%s350_s27] sm:$0x3] %v1363_v58  ;;  %v1642_v9 = vpop.f32.mrb[31].mxu0 }
 0xa27 PF: > { %s19_s30 = sadd.s32 1, %s1731_s30  }
 0xa28   : > { %p16_p4 = scmp.ge.s32.totalorder %s19_s30, 6  }
 0xa2a   :  { %18 = sbr.rel (!%p16_p4) target bundleno = 1 (0x1), region = 89 }

</bundles_post_ra>
